<compile_context>
chip_gen: v7x
topology: tpu7x:2x2x1
jax: 0.10.0
libtpu: 0.0.40
codegen_flags: <defaults>
</compile_context>

<pallas_src>
import functools

import numpy as np
import jax
import jax.numpy as jnp
from jax import lax
from jax.experimental import pallas as pl
from jax.experimental.pallas import tpu as pltpu


_TARGET_BLOCK_BYTES = 1 << 20  # ~1 MiB per block


def _fmix32(u):
    """murmur3 32-bit finalizer (good avalanche); uint32 wraparound math."""
    u = (u ^ (u >> 16)) * np.uint32(0x85EBCA6B)
    u = (u ^ (u >> 13)) * np.uint32(0xC2B2AE35)
    return u ^ (u >> 16)


def _dropout_kernel(seed_ref, x_ref, o_ref, *, threshold, scale,
                    cols, block_rows, block_cols):
    i = pl.program_id(0)
    j = pl.program_id(1)
    shp = x_ref.shape  # == (block_rows, block_cols), padded for edge blocks
    # Global flat element index -> mask is independent of the tiling and of
    # which TensorCore executes a tile.  (Wraps past 2^31 elements.)
    r = lax.broadcasted_iota(jnp.int32, shp, 0) + i * block_rows
    c = lax.broadcasted_iota(jnp.int32, shp, 1) + j * block_cols
    idx = r * cols + c
    # Stateless hash of (seed, flat index); plain VPU int ops, no pltpu.prng_*.
    s = (seed_ref[0].astype(jnp.uint32) * np.uint32(0x9E3779B1)
         + np.uint32(0x7F4A7C15))
    u = _fmix32(idx.astype(jnp.uint32) ^ s)
    bits = lax.bitcast_convert_type(u, jnp.int32)  # uniform over int32
    keep = bits >= jnp.int32(threshold)            # P(keep) == 1 - p
    o_ref[...] = jnp.where(keep, x_ref[...] * scale, 0.0).astype(o_ref.dtype)


def _dropout_2d(x2d, p, seed):
    rows, cols = x2d.shape
    itemsize = jnp.dtype(x2d.dtype).itemsize
    sub = max(8, 32 // itemsize)  # sublane packing: 8 f32 / 16 bf16 / 32 int8

    # Lane tile: whole last dim when modest ("equal to full dim" is always a
    # legal block, even for non-128-multiples); otherwise a 512-wide
    # lane-dense tile so huge rows never become a monster (VMEM-busting) block.
    block_cols = cols if cols <= 1024 else 512
    target_rows = max(sub,
                      (_TARGET_BLOCK_BYTES // (block_cols * itemsize)) // sub * sub)
    block_rows = rows if rows <= target_rows else target_rows

    grid = (pl.cdiv(rows, block_rows), pl.cdiv(cols, block_cols))

    # Compile-time constants baked into the kernel.
    threshold = int(round(p * 2.0 ** 32)) - (1 << 31)
    threshold = max(-(1 << 31), min(threshold, (1 << 31) - 1))
    scale = 1.0 / (1.0 - p)

    kernel = functools.partial(
        _dropout_kernel, threshold=threshold, scale=scale, cols=cols,
        block_rows=block_rows, block_cols=block_cols)

    seed_arr = jnp.asarray(seed, jnp.int32).reshape(1)

    # No wrapper pad / slice: partial edge blocks are handled by Pallas (OOB
    # writes discarded, garbage reads harmless for an elementwise op).
    # NOTE: input_output_aliases={1: 0} could be added when the caller donates
    # the input (halves the HBM footprint for huge activations).
    return pl.pallas_call(
        kernel,
        out_shape=jax.ShapeDtypeStruct((rows, cols), x2d.dtype),
        grid=grid,
        in_specs=[
            pl.BlockSpec(memory_space=pltpu.MemorySpace.SMEM),        # seed
            pl.BlockSpec((block_rows, block_cols), lambda i, j: (i, j)),
        ],
        out_specs=pl.BlockSpec((block_rows, block_cols), lambda i, j: (i, j)),
        compiler_params=pltpu.CompilerParams(
            dimension_semantics=("parallel", "parallel"),  # v7x 2-TC sharding
            vmem_limit_bytes=32 * 1024 * 1024),
    )(seed_arr, x2d)


def dense_dropout(x, p, seed=0, training=True):
    """nn.Dropout(p).forward for a dense array."""
    if not training or p == 0.0:
        return x
    if p >= 1.0:
        return jnp.zeros_like(x)
    if x.size == 0:
        return x
    orig_shape = x.shape
    if x.ndim >= 2:
        # Free reshape: collapses leading (major) dims only; the minor-dim
        # layout is untouched (feature dims are typically already lane-dense).
        x2d = x.reshape(-1, orig_shape[-1])
    else:
        # 1-D (e.g. sparse values): view as a wide lane-dense slab when the
        # size allows -- no pad, no copy of a trailing remainder.
        n = x.size
        w = next((cand for cand in (1024, 512, 256, 128)
                  if n % cand == 0 and n >= 8 * cand), None)
        if w is None:
            w = next((cand for cand in (1024, 512, 256, 128)
                      if n % cand == 0), None)
        x2d = x.reshape(-1, w) if w is not None else x.reshape(1, n)
    out2d = _dropout_2d(x2d, p, seed)
    return out2d.reshape(orig_shape)


def sparse_dropout(indices, values, shape, p, seed=0, training=True):
    """SparseDropout.forward on a COO (indices, values, shape) triple."""
    # TODO(synk): torch's input.coalesce() (summing duplicate indices) has no
    # clean Pallas equivalent here; values are assumed already coalesced.
    return indices, dense_dropout(values, p, seed, training), shape


def mixed_dropout(inp, p, seed=0, training=True):
    """MixedDropout.forward: COO triple -> sparse path, dense array otherwise."""
    if isinstance(inp, tuple):  # stands in for `input.is_sparse`
        indices, values, shape = inp
        return sparse_dropout(indices, values, shape, p, seed, training)
    return dense_dropout(inp, p, seed, training)


if __name__ == "__main__":
    p = 0.5
    scale = 1.0 / (1.0 - p)

    key = jax.random.PRNGKey(0)
    kd, ko, kv, kr, kc = jax.random.split(key, 5)

    # Dense path: node-feature style [N=256, F=128] (lane-dense last dim).
    x_dense = jax.random.normal(kd, (256, 128), jnp.float32)
    out_dense = mixed_dropout(x_dense, p=p, seed=0, training=True)

    # Odd-shaped dense input: exercises partial blocks / non-128 last dim.
    x_odd = jax.random.normal(ko, (3, 5, 100), jnp.float32) + 2.0
    out_odd = mixed_dropout(x_odd, p=p, seed=7, training=True)

    # Sparse path: COO (indices [2, nnz], values [nnz], shape).
    nnz, n = 1024, 256
    values = jax.random.normal(kv, (nnz,), jnp.float32) + 3.0  # away from 0
    indices = jnp.stack([
        jax.random.randint(kr, (nnz,), 0, n),
        jax.random.randint(kc, (nnz,), 0, n),
    ]).astype(jnp.int32)
    out_idx, out_vals, out_shape = mixed_dropout(
        (indices, values, (n, n)), p=p, seed=1, training=True)

    out_dense, out_odd, out_vals = jax.block_until_ready(
        (out_dense, out_odd, out_vals))

    # Eval mode is exactly the identity.
    assert jnp.array_equal(
        mixed_dropout(x_dense, p=p, seed=0, training=False), x_dense)

    def check(out, x):
        out = out.reshape(-1)
        x = x.reshape(-1)
        kept = out != 0.0
        # Survivors are exactly x / (1 - p).
        err = jnp.where(kept, jnp.abs(out - x * scale), 0.0)
        assert float(jnp.max(err)) < 1e-5
        # Drop rate is statistically consistent with p.
        frac_dropped = 1.0 - float(jnp.mean(kept.astype(jnp.float32)))
        tol = 6.0 * (p * (1.0 - p) / x.size) ** 0.5 + 0.02
        assert abs(frac_dropped - p) < tol, (frac_dropped, tol)

    check(out_dense, x_dense)
    check(out_odd, x_odd)
    check(out_vals, values)
    assert out_dense.shape == x_dense.shape and out_odd.shape == x_odd.shape
    assert out_vals.shape == values.shape
    assert jnp.array_equal(out_idx, indices) and out_shape == (n, n)

    print("KERNEL_OK")
</pallas_src>

<mosaic_0001>
module attributes {stable_mosaic.version = 11 : i64} {
  func.func @_dropout_kernel(%arg0: i32, %arg1: i32, %arg2: memref<1xi32, #tpu.memory_space<smem>>, %arg3: memref<256x128xf32, #tpu.memory_space<vmem>>, %arg4: memref<256x128xf32, #tpu.memory_space<vmem>>) attributes {dimension_semantics = [#tpu.dimension_semantics<parallel>, #tpu.dimension_semantics<parallel>], iteration_bounds = array<i64: 1, 1>, scalar_prefetch = 0 : i64, scratch_operands = 0 : i64, tpu.core_type = #tpu.core_type<tc>, window_params = [{transform_indices = @transform_0, window_bounds = array<i64: 1>}, {transform_indices = @transform_1, window_bounds = array<i64: 256, 128>}, {transform_indices = @transform_2, window_bounds = array<i64: 256, 128>}]} {
    %0 = tpu.iota {dimensions = array<i32: 0>} : vector<256x128xi32>
    %c256_i32 = arith.constant 256 : i32
    %1 = arith.muli %arg0, %c256_i32 : i32
    %2 = vector.broadcast %1 : i32 to vector<256x128xi32>
    %3 = arith.addi %0, %2 : vector<256x128xi32>
    %4 = tpu.iota {dimensions = array<i32: 1>} : vector<256x128xi32>
    %c128_i32 = arith.constant 128 : i32
    %5 = arith.muli %arg1, %c128_i32 : i32
    %6 = vector.broadcast %5 : i32 to vector<256x128xi32>
    %7 = arith.addi %4, %6 : vector<256x128xi32>
    %c128_i32_0 = arith.constant 128 : i32
    %8 = vector.broadcast %c128_i32_0 : i32 to vector<256x128xi32>
    %9 = arith.muli %3, %8 : vector<256x128xi32>
    %10 = arith.addi %9, %7 : vector<256x128xi32>
    %c0 = arith.constant 0 : index
    %11 = memref.load %arg2[%c0] : memref<1xi32, #tpu.memory_space<smem>>
    %c-1640531535_i32 = arith.constant -1640531535 : i32
    %12 = arith.muli %11, %c-1640531535_i32 : i32
    %c2135587861_i32 = arith.constant 2135587861 : i32
    %13 = arith.addi %12, %c2135587861_i32 : i32
    %14 = vector.broadcast %13 : i32 to vector<256x128xi32>
    %15 = arith.xori %10, %14 : vector<256x128xi32>
    %c16_i32 = arith.constant 16 : i32
    %16 = vector.broadcast %c16_i32 : i32 to vector<256x128xi32>
    %17 = arith.shrui %15, %16 : vector<256x128xi32>
    %18 = arith.xori %15, %17 : vector<256x128xi32>
    %c-2048144789_i32 = arith.constant -2048144789 : i32
    %19 = vector.broadcast %c-2048144789_i32 : i32 to vector<256x128xi32>
    %20 = arith.muli %18, %19 : vector<256x128xi32>
    %c13_i32 = arith.constant 13 : i32
    %21 = vector.broadcast %c13_i32 : i32 to vector<256x128xi32>
    %22 = arith.shrui %20, %21 : vector<256x128xi32>
    %23 = arith.xori %20, %22 : vector<256x128xi32>
    %c-1028477387_i32 = arith.constant -1028477387 : i32
    %24 = vector.broadcast %c-1028477387_i32 : i32 to vector<256x128xi32>
    %25 = arith.muli %23, %24 : vector<256x128xi32>
    %c16_i32_1 = arith.constant 16 : i32
    %26 = vector.broadcast %c16_i32_1 : i32 to vector<256x128xi32>
    %27 = arith.shrui %25, %26 : vector<256x128xi32>
    %28 = arith.xori %25, %27 : vector<256x128xi32>
    %29 = tpu.bitcast %28 : vector<256x128xi32> -> vector<256x128xi32>
    %c0_i32 = arith.constant 0 : i32
    %30 = vector.broadcast %c0_i32 : i32 to vector<256x128xi32>
    %31 = arith.cmpi sge, %29, %30 : vector<256x128xi32>
    %c0_2 = arith.constant 0 : index
    %c0_3 = arith.constant 0 : index
    %32 = vector.load %arg3[%c0_2, %c0_3] : memref<256x128xf32, #tpu.memory_space<vmem>>, vector<256x128xf32>
    %cst = arith.constant 2.000000e+00 : f32
    %33 = vector.broadcast %cst : f32 to vector<256x128xf32>
    %34 = arith.mulf %32, %33 : vector<256x128xf32>
    %cst_4 = arith.constant 0.000000e+00 : f32
    %35 = vector.broadcast %cst_4 : f32 to vector<256x128xf32>
    %36 = arith.select %31, %34, %35 : vector<256x128xi1>, vector<256x128xf32>
    %c0_5 = arith.constant 0 : index
    %c0_6 = arith.constant 0 : index
    %37 = vector.load %arg4[%c0_5, %c0_6] : memref<256x128xf32, #tpu.memory_space<vmem>>, vector<256x128xf32>
    tpu.vector_store %arg4[%c0_5, %c0_6], %36 {strides = array<i32>} : memref<256x128xf32, #tpu.memory_space<vmem>>, vector<256x128xf32>,
    return
  }
  func.func @transform_0(%arg0: i32, %arg1: i32) -> i32 {
    %c0_i32 = arith.constant 0 : i32
    %c0_i32_0 = arith.constant 0 : i32
    return %c0_i32 : i32
  }
  func.func @transform_1(%arg0: i32, %arg1: i32) -> (i32, i32) {
    %c0_i32 = arith.constant 0 : i32
    return %arg0, %arg1 : i32, i32
  }
  func.func @transform_2(%arg0: i32, %arg1: i32) -> (i32, i32) {
    %c0_i32 = arith.constant 0 : i32
    return %arg0, %arg1 : i32, i32
  }
}

</mosaic_0001>

<bundles_post_ra>
// kernel: tpu_custom_call.1
= control target key start
LH: loop header
LB: loop body
LE: loop exit
PB: predicated region body
PF: predicated region fallthrough
CT: control target
= control target key end

     0   :  { %8 = vsyncpa [#allocation4], 0  ;;  %s889_s0 = inlined_call_operand.<no memory space> [shape: s32[1], index: 0, kind: input, shape index: {}]   ;;  %s890_s1 = inlined_call_operand.hbm [shape: f32[256,128], index: 1, kind: input, shape index: {}]   ;;  %s891_s2 = inlined_call_operand.hbm [shape: f32[256,128], index: 2, kind: output, shape index: {}]  }
   0x1   :  { %9 = vsyncpa [#allocation5], 0  ;;  %s684_s9 = smov [#allocation3]   ;;  %s636_s13 = scalar_lea.hbm %s890_s1, 4096 }
   0x2   :  { %s17_s10 = sshll.u32 %s684_s9, 4  ;;  %p637_p0 = scmp.ne.s32.totalorder %s890_s1, %s636_s13  ;;  %s18_s10 = int_to_ptr.vmem [resolvable:$true] %s17_s10 }
   0x3   :  { %p640_p1 = scmp.lt.u32.totalorder %s636_s13, %s890_s1 }
   0x5   :  { %p642_p2 = pnand %p640_p1, %p637_p0 }
   0x7   :  { %645 = shalt.err (!%p642_p2)
}
   0x8   :  { %s646_s18 = scalar_lea.vmem %s18_s10, 4096  ;;  %p651_p4 = scmp.lt.s32.totalorder %s18_s10, %s18_s10 }
   0x9   :  { %p647_p3 = scmp.ne.s32.totalorder %s18_s10, %s646_s18  ;;  %p652_p5 = scmp.lt.s32.totalorder %s646_s18, %s646_s18 }
   0xb   :  { %p653_p6 = por %p652_p5, %p651_p4 }
   0xd   :  { %p654_p7 = pnand %p653_p6, %p647_p3 }
   0xf   :  { %657 = shalt.err (!%p654_p7)
}
  0x10   :  { %s685_s19 = smov 128   ;;  %s686_s20 = smov 8  }
  0x11   :  { %23 = dma.hbm_to_vmem [thread:$0]  %s890_s1, 4096, %s18_s10, [#allocation4], %s685_s19, %s685_s19, %s686_s20  }
  0x12   :  { %680 = dma.done.wait [#allocation4], 4096  }
  0x13   :  { %681 = vsyncadd [#allocation4], 4294963200  ;;  %v27_v0 = vlaneseq  ;;  %s164_s25 = smul.u32 2654435761, %s889_s0  ;;  %v487_v15 = vld [vmem:[#allocation3] sm:$0xff]  ;;  %v488_v16 = vld [vmem:[#allocation3 + $0x8] sm:$0xff] }
  0x14   :  { %v489_v17 = vld [vmem:[#allocation3 + $0x10] sm:$0xff]  ;;  %v740_v22 = vmul.f32 2.0, %v487_v15  ;;  %v490_v24 = vld [vmem:[#allocation3 + $0x18] sm:$0xff]  ;;  %v491_v25 = vld [vmem:[#allocation3 + $0x20] sm:$0xff]  ;;  %v746_v27 = vmul.f32 2.0, %v488_v16  ;;  %s687_s0 = smov [#allocation6]  }
  0x15   :  { %v721_v1 = vshrl.u32 %v27_v0, 7  ;;  %v723_v2 = vand.u32 127, %v27_v0  ;;  %s165_s26 = sadd.s32 2135587861, %s164_s25  ;;  %v749_v29 = vmul.f32 2.0, %v489_v17  ;;  %v753_v33 = vmul.f32 2.0, %v490_v24 }
  0x16   :  { %v729_v7 = vstv %s165_s26  ;;  %v492_v35 = vld [vmem:[#allocation3 + $0x28] sm:$0xff]  ;;  %v758_v38 = vmul.f32 2.0, %v491_v25  ;;  %s620_s1 = sshll.u32 %s687_s0, 4  ;;  %s621_s1 = int_to_ptr.vmem [resolvable:$true] %s620_s1 }
  0x17   :  { %v99_v3 = vmul.u32 128, %v721_v1  ;;  %v29_v4 = vadd.s32 8, %v721_v1  ;;  %v30_v5 = vadd.s32 16, %v721_v1  ;;  %v31_v6 = vadd.s32 24, %v721_v1  ;;  %s658_s27 = scalar_lea.vmem %s621_s1, 4096  ;;  %p663_p9 = scmp.lt.s32.totalorder %s621_s1, %s621_s1 }
  0x18   :  { %v32_v8 = vadd.s32 32, %v721_v1  ;;  %v33_v9 = vadd.s32 40, %v721_v1  ;;  %v34_v10 = vadd.s32 48, %v721_v1  ;;  %v35_v14 = vadd.s32 56, %v721_v1  ;;  %p659_p8 = scmp.ne.s32.totalorder %s621_s1, %s658_s27  ;;  %p664_p10 = scmp.lt.s32.totalorder %s658_s27, %s658_s27 }
  0x19   :  { %v131_v11 = vadd.s32 %v99_v3, %v723_v2  ;;  %v100_v12 = vmul.u32 128, %v29_v4  ;;  %v101_v13 = vmul.u32 128, %v30_v5  ;;  %v737_v20 = vadd.s32 64, %v721_v1 }
  0x1a   :  { %v102_v18 = vmul.u32 128, %v31_v6  ;;  %v103_v19 = vmul.u32 128, %v32_v8  ;;  %v744_v26 = vadd.s32 72, %v721_v1  ;;  %v762_v47 = vmul.f32 2.0, %v492_v35  ;;  %p665_p11 = por %p664_p10, %p663_p9 }
  0x1b   :  { %v167_v21 = vxor.u32 %v729_v7, %v131_v11  ;;  %v132_v23 = vadd.s32 %v100_v12, %v723_v2  ;;  %v133_v28 = vadd.s32 %v101_v13, %v723_v2  ;;  %v104_v39 = vmul.u32 128, %v33_v9 }
  0x1c   :  { %v134_v30 = vadd.s32 %v102_v18, %v723_v2  ;;  %v135_v34 = vadd.s32 %v103_v19, %v723_v2  ;;  %v105_v43 = vmul.u32 128, %v34_v10  ;;  %v106_v55 = vmul.u32 128, %v35_v14  ;;  %p666_p12 = pnand %p665_p11, %p659_p8 }
  0x1d   :  { %v199_v31 = vshrl.u32 %v167_v21, 16  ;;  %v168_v32 = vxor.u32 %v729_v7, %v132_v23  ;;  %v169_v36 = vxor.u32 %v729_v7, %v133_v28  ;;  %v136_v46 = vadd.s32 %v104_v39, %v723_v2 }
  0x1e   :  { %v170_v37 = vxor.u32 %v729_v7, %v134_v30  ;;  %v171_v42 = vxor.u32 %v729_v7, %v135_v34  ;;  %v137_v51 = vadd.s32 %v105_v43, %v723_v2  ;;  %v138_v63 = vadd.s32 %v106_v55, %v723_v2 }
  0x1f   :  { %v231_v40 = vxor.u32 %v199_v31, %v167_v21  ;;  %v200_v41 = vshrl.u32 %v168_v32, 16  ;;  %v201_v44 = vshrl.u32 %v169_v36, 16  ;;  %v172_v54 = vxor.u32 %v729_v7, %v136_v46 }
  0x20   :  { %v202_v45 = vshrl.u32 %v170_v37, 16  ;;  %v203_v50 = vshrl.u32 %v171_v42, 16  ;;  %v173_v59 = vxor.u32 %v729_v7, %v137_v51  ;;  %v174_v10 = vxor.u32 %v729_v7, %v138_v63 }
  0x21   :  { %v263_v48 = vmul.u32 2246822507, %v231_v40  ;;  %v232_v49 = vxor.u32 %v200_v41, %v168_v32  ;;  %v233_v52 = vxor.u32 %v201_v44, %v169_v36  ;;  %v204_v62 = vshrl.u32 %v172_v54, 16 }
  0x22   :  { %v234_v53 = vxor.u32 %v202_v45, %v170_v37  ;;  %v235_v58 = vxor.u32 %v203_v50, %v171_v42  ;;  %v205_v5 = vshrl.u32 %v173_v59, 16  ;;  %v206_v18 = vshrl.u32 %v174_v10, 16 }
  0x23   :  { %v295_v56 = vshrl.u32 %v263_v48, 13  ;;  %v264_v57 = vmul.u32 2246822507, %v232_v49  ;;  %v265_v60 = vmul.u32 2246822507, %v233_v52  ;;  %v236_v9 = vxor.u32 %v204_v62, %v172_v54  ;;  %v493_v52 = vld [vmem:[#allocation3 + $0x30] sm:$0xff] }
  0x24   :  { %v266_v61 = vmul.u32 2246822507, %v234_v53  ;;  %v267_v4 = vmul.u32 2246822507, %v235_v58  ;;  %v237_v14 = vxor.u32 %v205_v5, %v173_v59  ;;  %v238_v31 = vxor.u32 %v206_v18, %v174_v10 }
  0x25   :  { %v327_v0 = vxor.u32 %v295_v56, %v263_v48  ;;  %v296_v3 = vshrl.u32 %v264_v57, 13  ;;  %v297_v6 = vshrl.u32 %v265_v60, 13  ;;  %v268_v17 = vmul.u32 2246822507, %v236_v9 }
  0x26   :  { %v298_v8 = vshrl.u32 %v266_v61, 13  ;;  %v299_v13 = vshrl.u32 %v267_v4, 13  ;;  %v269_v24 = vmul.u32 2246822507, %v237_v14  ;;  %v270_v41 = vmul.u32 2246822507, %v238_v31 }
  0x27   :  { %v359_v11 = vmul.u32 3266489909, %v327_v0  ;;  %v328_v12 = vxor.u32 %v296_v3, %v264_v57  ;;  %v329_v15 = vxor.u32 %v297_v6, %v265_v60  ;;  %v300_v30 = vshrl.u32 %v268_v17, 13  ;;  %v495_v3 = vld [vmem:[#allocation3 + $0x40] sm:$0xff]  ;;  %v496_v6 = vld [vmem:[#allocation3 + $0x48] sm:$0xff] }
  0x28   :  { %v330_v16 = vxor.u32 %v298_v8, %v266_v61  ;;  %v331_v23 = vxor.u32 %v299_v13, %v267_v4  ;;  %v301_v36 = vshrl.u32 %v269_v24, 13  ;;  %v302_v53 = vshrl.u32 %v270_v41, 13  ;;  %v497_v13 = vld [vmem:[#allocation3 + $0x50] sm:$0xff] }
  0x29   :  { %v391_v19 = vshrl.u32 %v359_v11, 16  ;;  %v360_v21 = vmul.u32 3266489909, %v328_v12  ;;  %v361_v25 = vmul.u32 3266489909, %v329_v15  ;;  %v332_v40 = vxor.u32 %v300_v30, %v268_v17 }
  0x2a   :  { %v362_v28 = vmul.u32 3266489909, %v330_v16  ;;  %v363_v35 = vmul.u32 3266489909, %v331_v23  ;;  %v333_v44 = vxor.u32 %v301_v36, %v269_v24  ;;  %v525_v60 = vmul.f32 2.0, %v493_v52 }
  0x2b   :  { %v423_v32 = vxor.u32 %v391_v19, %v359_v11  ;;  %v392_v34 = vshrl.u32 %v360_v21, 16  ;;  %v393_v37 = vshrl.u32 %v361_v25, 16  ;;  %v364_v49 = vmul.u32 3266489909, %v332_v40 }
  0x2c   :  { %v394_v39 = vshrl.u32 %v362_v28, 16  ;;  %v395_v43 = vshrl.u32 %v363_v35, 16  ;;  %v365_v51 = vmul.u32 3266489909, %v333_v44  ;;  %v334_v61 = vxor.u32 %v302_v53, %v270_v41 }
  0x2d   :  { %vm455_vm0 = vcmp.ge.s32.totalorder %v423_v32, 0  ;;  %v424_v42 = vxor.u32 %v392_v34, %v360_v21  ;;  %v425_v46 = vxor.u32 %v393_v37, %v361_v25  ;;  %v396_v55 = vshrl.u32 %v364_v49, 16 }
  0x2e   :  { %v551_v45 = vsel %vm455_vm0, %v740_v22, 0.0  ;;  %v426_v48 = vxor.u32 %v394_v39, %v362_v28  ;;  %v427_v50 = vxor.u32 %v395_v43, %v363_v35  ;;  %v397_v22 = vshrl.u32 %v365_v51, 16  ;;  %v498_v28 = vld [vmem:[#allocation3 + $0x58] sm:$0xff] }
  0x2f   :  { %583 = vst [vmem:[#allocation6] sm:$0xff] %v551_v45  ;;  %vm456_vm1 = vcmp.ge.s32.totalorder %v424_v42, 0  ;;  %vm457_vm2 = vcmp.ge.s32.totalorder %v425_v46, 0  ;;  %v428_v59 = vxor.u32 %v396_v55, %v364_v49  ;;  %v107_v63 = vmul.u32 128, %v737_v20 }
  0x30   :  { %v552_v54 = vsel %vm456_vm1, %v746_v27, 0.0  ;;  %vm458_vm3 = vcmp.ge.s32.totalorder %v426_v48, 0  ;;  %v553_v56 = vsel %vm457_vm2, %v749_v29, 0.0  ;;  %vm459_vm4 = vcmp.ge.s32.totalorder %v427_v50, 0  ;;  %v494_v27 = vld [vmem:[#allocation3 + $0x38] sm:$0xff] }
  0x31   :  { %584 = vst [vmem:[#allocation6 + $0x8] sm:$0xff] %v552_v54  ;;  %v554_v57 = vsel %vm458_vm3, %v753_v33, 0.0  ;;  %585 = vst [vmem:[#allocation6 + $0x10] sm:$0xff] %v553_v56  ;;  %v555_v58 = vsel %vm459_vm4, %v758_v38, 0.0  ;;  %v429_v62 = vxor.u32 %v397_v22, %v365_v51  ;;  %v108_v0 = vmul.u32 128, %v744_v26  ;;  %v499_v56 = vld [vmem:[#allocation3 + $0x60] sm:$0xff] }
  0x32   :  { %586 = vst [vmem:[#allocation6 + $0x18] sm:$0xff] %v554_v57  ;;  %587 = vst [vmem:[#allocation6 + $0x20] sm:$0xff] %v555_v58  ;;  %vm460_vm5 = vcmp.ge.s32.totalorder %v428_v59, 0  ;;  %v366_v29 = vmul.u32 3266489909, %v334_v61  ;;  %v38_v33 = vadd.s32 80, %v721_v1  ;;  %v139_v38 = vadd.s32 %v107_v63, %v723_v2 }
  0x33   :  { %v556_v4 = vsel %vm460_vm5, %v762_v47, 0.0  ;;  %vm461_vm6 = vcmp.ge.s32.totalorder %v429_v62, 0  ;;  %v140_v5 = vadd.s32 %v108_v0, %v723_v2  ;;  %v526_v10 = vmul.f32 2.0, %v494_v27 }
  0x34   :  { %588 = vst [vmem:[#allocation6 + $0x28] sm:$0xff] %v556_v4  ;;  %v557_v8 = vsel %vm461_vm6, %v525_v60, 0.0  ;;  %v398_v9 = vshrl.u32 %v366_v29, 16  ;;  %v109_v20 = vmul.u32 128, %v38_v33  ;;  %v175_v26 = vxor.u32 %v729_v7, %v139_v38 }
  0x35   :  { %589 = vst [vmem:[#allocation6 + $0x30] sm:$0xff] %v557_v8  ;;  %v781_v11 = vmul.f32 2.0, %v495_v3  ;;  %v176_v12 = vxor.u32 %v729_v7, %v140_v5  ;;  %v39_v47 = vadd.s32 88, %v721_v1  ;;  %v785_v15 = vmul.f32 2.0, %v496_v6 }
  0x36   :  { %v430_v14 = vxor.u32 %v398_v9, %v366_v29  ;;  %v141_v16 = vadd.s32 %v109_v20, %v723_v2  ;;  %v40_v17 = vadd.s32 96, %v721_v1  ;;  %v207_v18 = vshrl.u32 %v175_v26, 16 }
  0x37   :  { %v208_v19 = vshrl.u32 %v176_v12, 16  ;;  %v110_v21 = vmul.u32 128, %v39_v47  ;;  %v41_v23 = vadd.s32 104, %v721_v1  ;;  %v791_v25 = vmul.f32 2.0, %v497_v13 }
  0x38   :  { %vm462_vm7 = vcmp.ge.s32.totalorder %v430_v14, 0  ;;  %v177_v24 = vxor.u32 %v729_v7, %v141_v16  ;;  %v111_v30 = vmul.u32 128, %v40_v17  ;;  %v239_v32 = vxor.u32 %v207_v18, %v175_v26 }
  0x39   :  { %v558_v31 = vsel %vm462_vm7, %v526_v10, 0.0  ;;  %v240_v34 = vxor.u32 %v208_v19, %v176_v12  ;;  %v142_v35 = vadd.s32 %v110_v21, %v723_v2  ;;  %v112_v39 = vmul.u32 128, %v41_v23 }
  0x3a   :  { %590 = vst [vmem:[#allocation6 + $0x38] sm:$0xff] %v558_v31  ;;  %v209_v36 = vshrl.u32 %v177_v24, 16  ;;  %v143_v37 = vadd.s32 %v111_v30, %v723_v2  ;;  %v42_v40 = vadd.s32 112, %v721_v1  ;;  %v271_v41 = vmul.u32 2246822507, %v239_v32  ;;  %v500_v30 = vld [vmem:[#allocation3 + $0x68] sm:$0xff] }
  0x3b   :  { %v272_v42 = vmul.u32 2246822507, %v240_v34  ;;  %v178_v43 = vxor.u32 %v729_v7, %v142_v35  ;;  %v797_v44 = vmul.f32 2.0, %v498_v28  ;;  %v144_v48 = vadd.s32 %v112_v39, %v723_v2 }
  0x3c   :  { %v241_v45 = vxor.u32 %v209_v36, %v177_v24  ;;  %v179_v46 = vxor.u32 %v729_v7, %v143_v37  ;;  %v113_v49 = vmul.u32 128, %v42_v40  ;;  %v303_v50 = vshrl.u32 %v271_v41, 13 }
  0x3d   :  { %v304_v51 = vshrl.u32 %v272_v42, 13  ;;  %v210_v52 = vshrl.u32 %v178_v43, 16  ;;  %v43_v53 = vadd.s32 120, %v721_v1  ;;  %v180_v57 = vxor.u32 %v729_v7, %v144_v48 }
  0x3e   :  { %v273_v54 = vmul.u32 2246822507, %v241_v45  ;;  %v211_v55 = vshrl.u32 %v179_v46, 16  ;;  %v145_v22 = vadd.s32 %v113_v49, %v723_v2  ;;  %v335_v58 = vxor.u32 %v303_v50, %v271_v41 }
  0x3f   :  { %v336_v59 = vxor.u32 %v304_v51, %v272_v42  ;;  %v242_v60 = vxor.u32 %v210_v52, %v178_v43  ;;  %v114_v61 = vmul.u32 128, %v43_v53  ;;  %v212_v63 = vshrl.u32 %v180_v57, 16 }
  0x40   :  { %v305_v62 = vshrl.u32 %v273_v54, 13  ;;  %v243_v27 = vxor.u32 %v211_v55, %v179_v46  ;;  %v181_v0 = vxor.u32 %v729_v7, %v145_v22  ;;  %v367_v29 = vmul.u32 3266489909, %v335_v58  ;;  %v501_v46 = vld [vmem:[#allocation3 + $0x70] sm:$0xff] }
  0x41   :  { %v368_v3 = vmul.u32 3266489909, %v336_v59  ;;  %v805_v33 = vmul.f32 2.0, %v499_v56  ;;  %v146_v4 = vadd.s32 %v114_v61, %v723_v2  ;;  %v274_v5 = vmul.u32 2246822507, %v242_v60  ;;  %v502_v59 = vld [vmem:[#allocation3 + $0x78] sm:$0xff] }
  0x42   :  { %v337_v38 = vxor.u32 %v305_v62, %v273_v54  ;;  %v275_v6 = vmul.u32 2246822507, %v243_v27  ;;  %v244_v8 = vxor.u32 %v212_v63, %v180_v57  ;;  %v399_v9 = vshrl.u32 %v367_v29, 16 }
  0x43   :  { %v400_v10 = vshrl.u32 %v368_v3, 16  ;;  %v213_v20 = vshrl.u32 %v181_v0, 16  ;;  %v182_v26 = vxor.u32 %v729_v7, %v146_v4  ;;  %v306_v13 = vshrl.u32 %v274_v5, 13 }
  0x44   :  { %v369_v12 = vmul.u32 3266489909, %v337_v38  ;;  %v307_v47 = vshrl.u32 %v275_v6, 13  ;;  %v276_v14 = vmul.u32 2246822507, %v244_v8  ;;  %v431_v16 = vxor.u32 %v399_v9, %v367_v29 }
  0x45   :  { %v432_v17 = vxor.u32 %v400_v10, %v368_v3  ;;  %v245_v18 = vxor.u32 %v213_v20, %v181_v0  ;;  %v214_v19 = vshrl.u32 %v182_v26, 16  ;;  %v338_v23 = vxor.u32 %v306_v13, %v274_v5  ;;  %v503_v3 = vld [vmem:[#allocation3 + $0x80] sm:$0xff]  ;;  %v504_v20 = vld [vmem:[#allocation3 + $0x88] sm:$0xff] }
  0x46   :  { %v401_v21 = vshrl.u32 %v369_v12, 16  ;;  %v339_v24 = vxor.u32 %v307_v47, %v275_v6  ;;  %v308_v28 = vshrl.u32 %v276_v14, 13  ;;  %vm463_vm8 = vcmp.ge.s32.totalorder %v431_v16, 0 }
  0x47   :  { %vm464_vm9 = vcmp.ge.s32.totalorder %v432_v17, 0  ;;  %v277_v31 = vmul.u32 2246822507, %v245_v18  ;;  %v246_v32 = vxor.u32 %v214_v19, %v182_v26  ;;  %v559_v34 = vsel %vm463_vm8, %v781_v11, 0.0  ;;  %v505_v19 = vld [vmem:[#allocation3 + $0x90] sm:$0xff] }
  0x48   :  { %v560_v35 = vsel %vm464_vm9, %v785_v15, 0.0  ;;  %v433_v36 = vxor.u32 %v401_v21, %v369_v12  ;;  %v370_v37 = vmul.u32 3266489909, %v338_v23  ;;  %591 = vst [vmem:[#allocation6 + $0x40] sm:$0xff] %v559_v34  ;;  %v371_v39 = vmul.u32 3266489909, %v339_v24 }
  0x49   :  { %592 = vst [vmem:[#allocation6 + $0x48] sm:$0xff] %v560_v35  ;;  %v340_v40 = vxor.u32 %v308_v28, %v276_v14  ;;  %v309_v41 = vshrl.u32 %v277_v31, 13  ;;  %v278_v42 = vmul.u32 2246822507, %v246_v32  ;;  %v532_v45 = vmul.f32 2.0, %v500_v30  ;;  %v506_v35 = vld [vmem:[#allocation3 + $0x98] sm:$0xff] }
  0x4a   :  { %vm465_vm10 = vcmp.ge.s32.totalorder %v433_v36, 0  ;;  %v402_v43 = vshrl.u32 %v370_v37, 16  ;;  %v44_v48 = vadd.s32 128, %v721_v1  ;;  %v403_v50 = vshrl.u32 %v371_v39, 16 }
  0x4b   :  { %v561_v49 = vsel %vm465_vm10, %v791_v25, 0.0  ;;  %v372_v11 = vmul.u32 3266489909, %v340_v40  ;;  %v341_v51 = vxor.u32 %v309_v41, %v277_v31  ;;  %v310_v52 = vshrl.u32 %v278_v42, 13 }
  0x4c   :  { %593 = vst [vmem:[#allocation6 + $0x50] sm:$0xff] %v561_v49  ;;  %v434_v15 = vxor.u32 %v402_v43, %v370_v37  ;;  %v115_v53 = vmul.u32 128, %v44_v48  ;;  %v45_v54 = vadd.s32 136, %v721_v1  ;;  %v435_v55 = vxor.u32 %v403_v50, %v371_v39 }
  0x4d   :  { %v404_v56 = vshrl.u32 %v372_v11, 16  ;;  %v373_v57 = vmul.u32 3266489909, %v341_v51  ;;  %v533_v22 = vmul.f32 2.0, %v501_v46  ;;  %v342_v58 = vxor.u32 %v310_v52, %v278_v42 }
  0x4e   :  { %vm466_vm11 = vcmp.ge.s32.totalorder %v434_v15, 0  ;;  %v147_v60 = vadd.s32 %v115_v53, %v723_v2  ;;  %v116_v61 = vmul.u32 128, %v45_v54  ;;  %vm467_vm12 = vcmp.ge.s32.totalorder %v435_v55, 0 }
  0x4f   :  { %v562_v25 = vsel %vm466_vm11, %v797_v44, 0.0  ;;  %v436_v62 = vxor.u32 %v404_v56, %v372_v11  ;;  %v405_v27 = vshrl.u32 %v373_v57, 16  ;;  %v563_v63 = vsel %vm467_vm12, %v805_v33, 0.0 }
  0x50   :  { %594 = vst [vmem:[#allocation6 + $0x58] sm:$0xff] %v562_v25  ;;  %v374_v0 = vmul.u32 3266489909, %v342_v58  ;;  %v183_v29 = vxor.u32 %v729_v7, %v147_v60  ;;  %v148_v4 = vadd.s32 %v116_v61, %v723_v2  ;;  %595 = vst [vmem:[#allocation6 + $0x60] sm:$0xff] %v563_v63  ;;  %v534_v5 = vmul.f32 2.0, %v502_v59 }
  0x51   :  { %vm468_vm13 = vcmp.ge.s32.totalorder %v436_v62, 0  ;;  %v437_v38 = vxor.u32 %v405_v27, %v373_v57  ;;  %v46_v6 = vadd.s32 144, %v721_v1  ;;  %v821_v33 = vmul.f32 2.0, %v503_v3 }
  0x52   :  { %v564_v8 = vsel %vm468_vm13, %v532_v45, 0.0  ;;  %v406_v44 = vshrl.u32 %v374_v0, 16  ;;  %v215_v9 = vshrl.u32 %v183_v29, 16  ;;  %v184_v10 = vxor.u32 %v729_v7, %v148_v4 }
  0x53   :  { %596 = vst [vmem:[#allocation6 + $0x68] sm:$0xff] %v564_v8  ;;  %vm469_vm14 = vcmp.ge.s32.totalorder %v437_v38, 0  ;;  %v117_v26 = vmul.u32 128, %v46_v6  ;;  %v47_v12 = vadd.s32 152, %v721_v1  ;;  %v824_v17 = vmul.f32 2.0, %v504_v20 }
  0x54   :  { %v565_v13 = vsel %vm469_vm14, %v533_v22, 0.0  ;;  %v438_v47 = vxor.u32 %v406_v44, %v374_v0  ;;  %v247_v14 = vxor.u32 %v215_v9, %v183_v29  ;;  %v216_v16 = vshrl.u32 %v184_v10, 16 }
  0x55   :  { %597 = vst [vmem:[#allocation6 + $0x70] sm:$0xff] %v565_v13  ;;  %v149_v18 = vadd.s32 %v117_v26, %v723_v2  ;;  %v118_v21 = vmul.u32 128, %v47_v12  ;;  %v48_v23 = vadd.s32 160, %v721_v1  ;;  %v49_v30 = vadd.s32 168, %v721_v1 }
  0x56   :  { %vm470_vm15 = vcmp.ge.s32.totalorder %v438_v47, 0  ;;  %v279_v24 = vmul.u32 2246822507, %v247_v14  ;;  %v248_v28 = vxor.u32 %v216_v16, %v184_v10  ;;  %v831_v40 = vmul.f32 2.0, %v505_v19 }
  0x57   :  { %v566_v31 = vsel %vm470_vm15, %v534_v5, 0.0  ;;  %v185_v32 = vxor.u32 %v729_v7, %v149_v18  ;;  %v150_v34 = vadd.s32 %v118_v21, %v723_v2  ;;  %v119_v36 = vmul.u32 128, %v48_v23  ;;  %v507_v18 = vld [vmem:[#allocation3 + $0xa0] sm:$0xff] }
  0x58   :  { %598 = vst [vmem:[#allocation6 + $0x78] sm:$0xff] %v566_v31  ;;  %v311_v37 = vshrl.u32 %v279_v24, 13  ;;  %v280_v39 = vmul.u32 2246822507, %v248_v28  ;;  %v120_v41 = vmul.u32 128, %v49_v30  ;;  %v50_v46 = vadd.s32 176, %v721_v1 }
  0x59   :  { %v217_v42 = vshrl.u32 %v185_v32, 16  ;;  %v186_v43 = vxor.u32 %v729_v7, %v150_v34  ;;  %v151_v45 = vadd.s32 %v119_v36, %v723_v2  ;;  %v836_v50 = vmul.f32 2.0, %v506_v35 }
  0x5a   :  { %v343_v48 = vxor.u32 %v311_v37, %v279_v24  ;;  %v312_v49 = vshrl.u32 %v280_v39, 13  ;;  %v152_v11 = vadd.s32 %v120_v41, %v723_v2  ;;  %v121_v53 = vmul.u32 128, %v50_v46 }
  0x5b   :  { %v249_v51 = vxor.u32 %v217_v42, %v185_v32  ;;  %v218_v15 = vshrl.u32 %v186_v43, 16  ;;  %v187_v52 = vxor.u32 %v729_v7, %v151_v45  ;;  %v51_v57 = vadd.s32 184, %v721_v1  ;;  %v508_v32 = vld [vmem:[#allocation3 + $0xa8] sm:$0xff] }
  0x5c   :  { %v375_v54 = vmul.u32 3266489909, %v343_v48  ;;  %v344_v55 = vxor.u32 %v312_v49, %v280_v39  ;;  %v188_v56 = vxor.u32 %v729_v7, %v152_v11  ;;  %v153_v60 = vadd.s32 %v121_v53, %v723_v2  ;;  %v509_v53 = vld [vmem:[#allocation3 + $0xb0] sm:$0xff] }
  0x5d   :  { %v281_v22 = vmul.u32 2246822507, %v249_v51  ;;  %v250_v58 = vxor.u32 %v218_v15, %v186_v43  ;;  %v219_v59 = vshrl.u32 %v187_v52, 16  ;;  %v122_v27 = vmul.u32 128, %v51_v57 }
  0x5e   :  { %v407_v61 = vshrl.u32 %v375_v54, 16  ;;  %v376_v25 = vmul.u32 3266489909, %v344_v55  ;;  %v220_v62 = vshrl.u32 %v188_v56, 16  ;;  %v189_v3 = vxor.u32 %v729_v7, %v153_v60 }
  0x5f   :  { %v313_v63 = vshrl.u32 %v281_v22, 13  ;;  %v282_v0 = vmul.u32 2246822507, %v250_v58  ;;  %v251_v29 = vxor.u32 %v219_v59, %v187_v52  ;;  %v154_v6 = vadd.s32 %v122_v27, %v723_v2 }
  0x60   :  { %v439_v4 = vxor.u32 %v407_v61, %v375_v54  ;;  %v408_v38 = vshrl.u32 %v376_v25, 16  ;;  %v252_v5 = vxor.u32 %v220_v62, %v188_v56  ;;  %v221_v10 = vshrl.u32 %v189_v3, 16 }
  0x61   :  { %v345_v8 = vxor.u32 %v313_v63, %v281_v22  ;;  %v314_v44 = vshrl.u32 %v282_v0, 13  ;;  %v283_v9 = vmul.u32 2246822507, %v251_v29  ;;  %v190_v12 = vxor.u32 %v729_v7, %v154_v6 }
  0x62   :  { %vm471_vm0 = vcmp.ge.s32.totalorder %v439_v4, 0  ;;  %v440_v20 = vxor.u32 %v408_v38, %v376_v25  ;;  %v284_v26 = vmul.u32 2246822507, %v252_v5  ;;  %v253_v21 = vxor.u32 %v221_v10, %v189_v3 }
  0x63   :  { %v567_v13 = vsel %vm471_vm0, %v821_v33, 0.0  ;;  %v377_v47 = vmul.u32 3266489909, %v345_v8  ;;  %v346_v14 = vxor.u32 %v314_v44, %v282_v0  ;;  %v315_v16 = vshrl.u32 %v283_v9, 13  ;;  %v510_v0 = vld [vmem:[#allocation3 + $0xb8] sm:$0xff] }
  0x64   :  { %599 = vst [vmem:[#allocation6 + $0x80] sm:$0xff] %v567_v13  ;;  %vm472_vm1 = vcmp.ge.s32.totalorder %v440_v20, 0  ;;  %v316_v19 = vshrl.u32 %v284_v26, 13  ;;  %v222_v23 = vshrl.u32 %v190_v12, 16  ;;  %v539_v34 = vmul.f32 2.0, %v507_v18 }
  0x65   :  { %v568_v24 = vsel %vm472_vm1, %v824_v17, 0.0  ;;  %v409_v28 = vshrl.u32 %v377_v47, 16  ;;  %v378_v30 = vmul.u32 3266489909, %v346_v14  ;;  %v347_v31 = vxor.u32 %v315_v16, %v283_v9  ;;  %v511_v14 = vld [vmem:[#allocation3 + $0xc0] sm:$0xff] }
  0x66   :  { %600 = vst [vmem:[#allocation6 + $0x88] sm:$0xff] %v568_v24  ;;  %v348_v35 = vxor.u32 %v316_v19, %v284_v26  ;;  %v285_v36 = vmul.u32 2246822507, %v253_v21  ;;  %v254_v33 = vxor.u32 %v222_v23, %v190_v12  ;;  %v52_v42 = vadd.s32 192, %v721_v1 }
  0x67   :  { %v441_v37 = vxor.u32 %v409_v28, %v377_v47  ;;  %v410_v39 = vshrl.u32 %v378_v30, 16  ;;  %v379_v41 = vmul.u32 3266489909, %v347_v31  ;;  %v540_v45 = vmul.f32 2.0, %v508_v32 }
  0x68   :  { %v380_v43 = vmul.u32 3266489909, %v348_v35  ;;  %v317_v46 = vshrl.u32 %v285_v36, 13  ;;  %v286_v48 = vmul.u32 2246822507, %v254_v33  ;;  %v53_v57 = vadd.s32 200, %v721_v1 }
  0x69   :  { %vm473_vm2 = vcmp.ge.s32.totalorder %v441_v37, 0  ;;  %v442_v17 = vxor.u32 %v410_v39, %v378_v30  ;;  %v411_v49 = vshrl.u32 %v379_v41, 16  ;;  %v123_v11 = vmul.u32 128, %v52_v42  ;;  %v512_v30 = vld [vmem:[#allocation3 + $0xc8] sm:$0xff] }
  0x6a   :  { %v569_v51 = vsel %vm473_vm2, %v831_v40, 0.0  ;;  %v412_v15 = vshrl.u32 %v380_v43, 16  ;;  %v349_v52 = vxor.u32 %v317_v46, %v285_v36  ;;  %v318_v54 = vshrl.u32 %v286_v48, 13 }
  0x6b   :  { %601 = vst [vmem:[#allocation6 + $0x90] sm:$0xff] %v569_v51  ;;  %vm474_vm3 = vcmp.ge.s32.totalorder %v442_v17, 0  ;;  %v443_v55 = vxor.u32 %v411_v49, %v379_v41  ;;  %v155_v56 = vadd.s32 %v123_v11, %v723_v2  ;;  %v541_v61 = vmul.f32 2.0, %v509_v53 }
  0x6c   :  { %v570_v22 = vsel %vm474_vm3, %v836_v50, 0.0  ;;  %v444_v58 = vxor.u32 %v412_v15, %v380_v43  ;;  %v381_v59 = vmul.u32 3266489909, %v349_v52  ;;  %v350_v60 = vxor.u32 %v318_v54, %v286_v48 }
  0x6d   :  { %602 = vst [vmem:[#allocation6 + $0x98] sm:$0xff] %v570_v22  ;;  %vm475_vm4 = vcmp.ge.s32.totalorder %v443_v55, 0  ;;  %v191_v40 = vxor.u32 %v729_v7, %v155_v56  ;;  %v124_v25 = vmul.u32 128, %v53_v57  ;;  %v54_v50 = vadd.s32 208, %v721_v1 }
  0x6e   :  { %v571_v62 = vsel %vm475_vm4, %v539_v34, 0.0  ;;  %vm476_vm5 = vcmp.ge.s32.totalorder %v444_v58, 0  ;;  %v413_v27 = vshrl.u32 %v381_v59, 16  ;;  %v382_v63 = vmul.u32 3266489909, %v350_v60 }
  0x6f   :  { %603 = vst [vmem:[#allocation6 + $0xa0] sm:$0xff] %v571_v62  ;;  %v572_v29 = vsel %vm476_vm5, %v540_v45, 0.0  ;;  %v223_v3 = vshrl.u32 %v191_v40, 16  ;;  %v156_v4 = vadd.s32 %v124_v25, %v723_v2  ;;  %v55_v6 = vadd.s32 216, %v721_v1 }
  0x70   :  { %604 = vst [vmem:[#allocation6 + $0xa8] sm:$0xff] %v572_v29  ;;  %v445_v38 = vxor.u32 %v413_v27, %v381_v59  ;;  %v414_v5 = vshrl.u32 %v382_v63, 16  ;;  %v542_v8 = vmul.f32 2.0, %v510_v0  ;;  %v125_v10 = vmul.u32 128, %v54_v50 }
  0x71   :  { %v255_v44 = vxor.u32 %v223_v3, %v191_v40  ;;  %v192_v9 = vxor.u32 %v729_v7, %v156_v4  ;;  %v126_v26 = vmul.u32 128, %v55_v6  ;;  %v56_v12 = vadd.s32 224, %v721_v1  ;;  %v513_v4 = vld [vmem:[#allocation3 + $0xd0] sm:$0xff] }
  0x72   :  { %vm477_vm6 = vcmp.ge.s32.totalorder %v445_v38, 0  ;;  %v446_v20 = vxor.u32 %v414_v5, %v382_v63  ;;  %v157_v18 = vadd.s32 %v125_v10, %v723_v2  ;;  %v543_v32 = vmul.f32 2.0, %v511_v14 }
  0x73   :  { %v573_v13 = vsel %vm477_vm6, %v541_v61, 0.0  ;;  %v287_v47 = vmul.u32 2246822507, %v255_v44  ;;  %v224_v16 = vshrl.u32 %v192_v9, 16  ;;  %v158_v19 = vadd.s32 %v126_v26, %v723_v2 }
  0x74   :  { %605 = vst [vmem:[#allocation6 + $0xb0] sm:$0xff] %v573_v13  ;;  %vm478_vm7 = vcmp.ge.s32.totalorder %v446_v20, 0  ;;  %v127_v21 = vmul.u32 128, %v56_v12  ;;  %v193_v31 = vxor.u32 %v729_v7, %v157_v18  ;;  %v57_v36 = vadd.s32 232, %v721_v1  ;;  %v514_v13 = vld [vmem:[#allocation3 + $0xd8] sm:$0xff] }
  0x75   :  { %v574_v23 = vsel %vm478_vm7, %v542_v8, 0.0  ;;  %v319_v24 = vshrl.u32 %v287_v47, 13  ;;  %v256_v28 = vxor.u32 %v224_v16, %v192_v9  ;;  %v194_v34 = vxor.u32 %v729_v7, %v158_v19 }
  0x76   :  { %606 = vst [vmem:[#allocation6 + $0xb8] sm:$0xff] %v574_v23  ;;  %v159_v35 = vadd.s32 %v127_v21, %v723_v2  ;;  %v225_v39 = vshrl.u32 %v193_v31, 16  ;;  %v58_v41 = vadd.s32 240, %v721_v1  ;;  %v544_v42 = vmul.f32 2.0, %v512_v30 }
  0x77   :  { %v351_v33 = vxor.u32 %v319_v24, %v287_v47  ;;  %v288_v37 = vmul.u32 2246822507, %v256_v28  ;;  %v226_v43 = vshrl.u32 %v194_v34, 16  ;;  %v128_v46 = vmul.u32 128, %v57_v36  ;;  %v515_v24 = vld [vmem:[#allocation3 + $0xe0] sm:$0xff] }
  0x78   :  { %v195_v45 = vxor.u32 %v729_v7, %v159_v35  ;;  %v257_v49 = vxor.u32 %v225_v39, %v193_v31  ;;  %v129_v11 = vmul.u32 128, %v58_v41  ;;  %v59_v53 = vadd.s32 248, %v721_v1 }
  0x79   :  { %v383_v48 = vmul.u32 3266489909, %v351_v33  ;;  %v320_v17 = vshrl.u32 %v288_v37, 13  ;;  %v258_v51 = vxor.u32 %v226_v43, %v194_v34  ;;  %v160_v52 = vadd.s32 %v128_v46, %v723_v2 }
  0x7a   :  { %v227_v15 = vshrl.u32 %v195_v45, 16  ;;  %v289_v56 = vmul.u32 2246822507, %v257_v49  ;;  %v161_v57 = vadd.s32 %v129_v11, %v723_v2  ;;  %v130_v60 = vmul.u32 128, %v59_v53 }
  0x7b   :  { %v415_v54 = vshrl.u32 %v383_v48, 16  ;;  %v352_v55 = vxor.u32 %v320_v17, %v288_v37  ;;  %v290_v22 = vmul.u32 2246822507, %v258_v51  ;;  %v196_v59 = vxor.u32 %v729_v7, %v160_v52  ;;  %v517_v17 = vld [vmem:[#allocation3 + $0xf0] sm:$0xff] }
  0x7c   :  { %v259_v58 = vxor.u32 %v227_v15, %v195_v45  ;;  %v321_v25 = vshrl.u32 %v289_v56, 13  ;;  %v197_v62 = vxor.u32 %v729_v7, %v161_v57  ;;  %v162_v1 = vadd.s32 %v130_v60, %v723_v2  ;;  %v516_v45 = vld [vmem:[#allocation3 + $0xe8] sm:$0xff] }
  0x7d   :  { %v447_v61 = vxor.u32 %v415_v54, %v383_v48  ;;  %v384_v40 = vmul.u32 3266489909, %v352_v55  ;;  %v322_v27 = vshrl.u32 %v290_v22, 13  ;;  %v228_v0 = vshrl.u32 %v196_v59, 16 }
  0x7e   :  { %v291_v63 = vmul.u32 2246822507, %v259_v58  ;;  %v353_v3 = vxor.u32 %v321_v25, %v289_v56  ;;  %v229_v50 = vshrl.u32 %v197_v62, 16  ;;  %v198_v20 = vxor.u32 %v729_v7, %v162_v1 }
  0x7f   :  { %vm479_vm8 = vcmp.ge.s32.totalorder %v447_v61, 0  ;;  %v416_v29 = vshrl.u32 %v384_v40, 16  ;;  %v354_v5 = vxor.u32 %v322_v27, %v290_v22  ;;  %v260_v8 = vxor.u32 %v228_v0, %v196_v59  ;;  %v518_v22 = vld [vmem:[#allocation3 + $0xf8] sm:$0xff] }
  0x80   :  { %v575_v38 = vsel %vm479_vm8, %v543_v32, 0.0  ;;  %v323_v6 = vshrl.u32 %v291_v63, 13  ;;  %v385_v9 = vmul.u32 3266489909, %v353_v3  ;;  %v261_v10 = vxor.u32 %v229_v50, %v197_v62 }
  0x81   :  { %607 = vst [vmem:[#allocation6 + $0xc0] sm:$0xff] %v575_v38  ;;  %v448_v44 = vxor.u32 %v416_v29, %v384_v40  ;;  %v545_v26 = vmul.f32 2.0, %v513_v4  ;;  %v386_v12 = vmul.u32 3266489909, %v354_v5  ;;  %v292_v2 = vmul.u32 2246822507, %v260_v8 }
  0x82   :  { %v355_v47 = vxor.u32 %v323_v6, %v291_v63  ;;  %v417_v14 = vshrl.u32 %v385_v9, 16  ;;  %v293_v16 = vmul.u32 2246822507, %v261_v10  ;;  %v230_v18 = vshrl.u32 %v198_v20, 16 }
  0x83   :  { %vm480_vm9 = vcmp.ge.s32.totalorder %v448_v44, 0  ;;  %v418_v21 = vshrl.u32 %v386_v12, 16  ;;  %v324_v28 = vshrl.u32 %v292_v2, 13  ;;  %v546_v31 = vmul.f32 2.0, %v514_v13 }
  0x84   :  { %v576_v19 = vsel %vm480_vm9, %v544_v42, 0.0  ;;  %v387_v23 = vmul.u32 3266489909, %v355_v47  ;;  %v449_v30 = vxor.u32 %v417_v14, %v385_v9  ;;  %v325_v32 = vshrl.u32 %v293_v16, 13 }
  0x85   :  { %608 = vst [vmem:[#allocation6 + $0xc8] sm:$0xff] %v576_v19  ;;  %v262_v34 = vxor.u32 %v230_v18, %v198_v20  ;;  %v450_v7 = vxor.u32 %v418_v21, %v386_v12  ;;  %v356_v36 = vxor.u32 %v324_v28, %v292_v2  ;;  %v547_v33 = vmul.f32 2.0, %v515_v24 }
  0x86   :  { %v419_v35 = vshrl.u32 %v387_v23, 16  ;;  %vm481_vm10 = vcmp.ge.s32.totalorder %v449_v30, 0  ;;  %v357_v37 = vxor.u32 %v325_v32, %v293_v16  ;;  %v548_v15 = vmul.f32 2.0, %v516_v45 }
  0x87   :  { %v294_v39 = vmul.u32 2246822507, %v262_v34  ;;  %v577_v41 = vsel %vm481_vm10, %v545_v26, 0.0  ;;  %vm482_vm11 = vcmp.ge.s32.totalorder %v450_v7, 0  ;;  %v388_v42 = vmul.u32 3266489909, %v356_v36 }
  0x88   :  { %v451_v43 = vxor.u32 %v419_v35, %v387_v23  ;;  %609 = vst [vmem:[#allocation6 + $0xd0] sm:$0xff] %v577_v41  ;;  %v578_v46 = vsel %vm482_vm11, %v546_v31, 0.0  ;;  %v389_v48 = vmul.u32 3266489909, %v357_v37  ;;  %v549_v55 = vmul.f32 2.0, %v517_v17 }
  0x89   :  { %v326_v49 = vshrl.u32 %v294_v39, 13  ;;  %610 = vst [vmem:[#allocation6 + $0xd8] sm:$0xff] %v578_v46  ;;  %v420_v11 = vshrl.u32 %v388_v42, 16  ;;  %v550_v61 = vmul.f32 2.0, %v518_v22 }
  0x8a   :  { %vm483_vm12 = vcmp.ge.s32.totalorder %v451_v43, 0  ;;  %v421_v52 = vshrl.u32 %v389_v48, 16 }
  0x8b   :  { %v579_v51 = vsel %vm483_vm12, %v547_v33, 0.0  ;;  %v358_v53 = vxor.u32 %v326_v49, %v294_v39  ;;  %v452_v54 = vxor.u32 %v420_v11, %v388_v42 }
  0x8c   :  { %611 = vst [vmem:[#allocation6 + $0xe0] sm:$0xff] %v579_v51  ;;  %v453_v56 = vxor.u32 %v421_v52, %v389_v48 }
  0x8d   :  { %v390_v57 = vmul.u32 3266489909, %v358_v53  ;;  %vm484_vm13 = vcmp.ge.s32.totalorder %v452_v54, 0 }
  0x8e   :  { %v580_v58 = vsel %vm484_vm13, %v548_v15, 0.0  ;;  %vm485_vm14 = vcmp.ge.s32.totalorder %v453_v56, 0 }
  0x8f   :  { %v422_v59 = vshrl.u32 %v390_v57, 16  ;;  %612 = vst [vmem:[#allocation6 + $0xe8] sm:$0xff] %v580_v58  ;;  %v581_v60 = vsel %vm485_vm14, %v549_v55, 0.0 }
  0x90   :  { %613 = vst [vmem:[#allocation6 + $0xf0] sm:$0xff] %v581_v60 }
  0x91   :  { %v454_v40 = vxor.u32 %v422_v59, %v390_v57 }
  0x93   :  { %vm486_vm15 = vcmp.ge.s32.totalorder %v454_v40, 0 }
  0x94   :  { %v582_v25 = vsel %vm486_vm15, %v550_v61, 0.0 }
  0x95   :  { %614 = vst [vmem:[#allocation6 + $0xf8] sm:$0xff] %v582_v25 }
  0x96   :  { %669 = shalt.err (!%p666_p12)
}
  0x97   :  { %s670_s30 = scalar_lea.hbm %s891_s2, 4096 }
  0x98   :  { %p671_p13 = scmp.ne.s32.totalorder %s891_s2, %s670_s30  ;;  %p674_p0 = scmp.lt.u32.totalorder %s670_s30, %s891_s2 }
  0x9a   :  { %p676_p1 = pnand %p674_p0, %p671_p13 }
  0x9c   :  { %679 = shalt.err (!%p676_p1)
}
  0x9d   :  { %626 = dma.vmem_to_hbm [thread:$0]  %s621_s1, 4096, %s891_s2, [#allocation5], %s685_s19, %s685_s19, %s686_s20  }
  0x9e   :  { %682 = dma.done.wait [#allocation5], 4096  }
  0x9f   :  { %683 = vsyncadd [#allocation5], 4294963200 }
  0xa0   :  { %630 = vsyncpa [#allocation4], 1 }
  0xa1   :  { %631 = vsyncpa [#allocation5], 1 }

</bundles_post_ra>
